<compile_context>
chip_gen: v7x
topology: tpu7x:2x2x1
jax: 0.10.0
libtpu: 0.0.40
codegen_flags: <defaults>
</compile_context>

<pallas_src>
import functools

import jax
import jax.numpy as jnp
from jax.experimental import pallas as pl
from jax.experimental.pallas import tpu as pltpu


def _leaky_relu(x, slope=0.01):
    # PyTorch F.leaky_relu default negative_slope = 0.01
    return jnp.where(x >= 0, x, slope * x)


def _relu(x):
    return jnp.maximum(x, 0.0)


_HIDDEN_ACTS = (_relu, _relu, _leaky_relu, _leaky_relu)   # layers 2..5


def unet_kernel(x_ref, w1_ref, wh_ref, bh_ref, w6_ref, b6_ref, o_ref):
    """One batch tile through all 6 layers.

    MXU operands are bf16; accumulation (preferred_element_type), bias-add and
    relu/leaky_relu stay f32 (safe on v5e's f32-only VPU).
    """
    # Layer 1: K = x_dim (unpadded, e.g. 32). MXU-underutilized but layer 1 is
    # 1/6 of compute and compute has slack; avoids the K-pad HBM traffic.
    h = jnp.dot(x_ref[...], w1_ref[...], preferred_element_type=jnp.float32)
    h = _leaky_relu(h + bh_ref[0:1, :])

    # Layers 2-5: stacked (4, H, H) hidden weights, static slice per layer (unrolled).
    for l, act in enumerate(_HIDDEN_ACTS):
        h = jnp.dot(h.astype(jnp.bfloat16), wh_ref[l],
                    preferred_element_type=jnp.float32)
        h = act(h + bh_ref[l + 1:l + 2, :])

    # Output layer: (H, u_dim) narrow output (last dim == full array dim -> legal block).
    u = jnp.dot(h.astype(jnp.bfloat16), w6_ref[...],
                preferred_element_type=jnp.float32) + b6_ref[...]
    o_ref[...] = u.astype(o_ref.dtype)


def prepare_params(params):
    """One-time weight prep (do NOT call per forward step).

    PyTorch (out, in) weights -> (in, out) bf16; hidden (H,H) weights stacked
    into one (4,H,H) operand; b1..b5 stacked into (5,H) f32; b6 kept (1,u_dim) f32.
    """
    w1 = params["w1"].T.astype(jnp.bfloat16)                                        # (x_dim, H)
    wh = jnp.stack([params[f"w{i}"].T for i in range(2, 6)]).astype(jnp.bfloat16)   # (4, H, H)
    bh = jnp.stack([params[f"b{i}"] for i in range(1, 6)]).astype(jnp.float32)      # (5, H)
    w6 = params["w6"].T.astype(jnp.bfloat16)                                        # (H, u_dim)
    b6 = params["b6"].reshape(1, -1).astype(jnp.float32)                            # (1, u_dim)
    return (w1, wh, bh, w6, b6)


def _choose_tile_b(B):
    """Tile-size policy (B is a concrete int at trace time).

    Tiny batches: one tile rounded up to the bf16 sublane pack (16).
    Large batches: big tiles (amortize ~0.35 us/grid-step, ~85% of HBM roofline at
    >=512-row tiles) but keep >= 2 tiles so both v7x TensorCores get work;
    multiples of 256, capped at 2048.
    """
    if B <= 256:
        return max(16, ((B + 15) // 16) * 16)
    t = (B // 2) // 256 * 256
    return max(256, min(2048, t))


@jax.jit
def unet_forward(x, prepped):
    """x: (B, x_dim) float32.  prepped: output of prepare_params (done once)."""
    w1, wh, bh, w6, b6 = prepped
    B, x_dim = x.shape
    H = w1.shape[1]
    u_dim = w6.shape[1]

    tile_b = _choose_tile_b(B)
    grid = pl.cdiv(B, tile_b)
    B_pad = grid * tile_b

    # Cast once; pad ONLY the batch remainder (no full-array rebuild, no K pad).
    x_bf = x.astype(jnp.bfloat16)
    if B_pad != B:
        x_bf = jnp.pad(x_bf, ((0, B_pad - B), (0, 0)))

    flops = 2 * B_pad * (x_dim * H + 4 * H * H + H * u_dim)
    bytes_accessed = (B_pad * (x_dim * 2 + u_dim * 4)
                      + w1.size * 2 + wh.size * 2 + bh.size * 4
                      + w6.size * 2 + b6.size * 4)

    out = pl.pallas_call(
        unet_kernel,
        out_shape=jax.ShapeDtypeStruct((B_pad, u_dim), jnp.float32),
        grid=(grid,),
        in_specs=[
            # Batch-tiled input, pipelined across grid steps.
            pl.BlockSpec((tile_b, x_dim), lambda i: (i, 0)),
            # Weights/biases: constant index_map -> DMA'd once, VMEM-resident.
            pl.BlockSpec(w1.shape, lambda i: (0, 0)),
            pl.BlockSpec(wh.shape, lambda i: (0, 0, 0)),
            pl.BlockSpec(bh.shape, lambda i: (0, 0)),
            pl.BlockSpec(w6.shape, lambda i: (0, 0)),
            pl.BlockSpec(b6.shape, lambda i: (0, 0)),
        ],
        out_specs=pl.BlockSpec((tile_b, u_dim), lambda i: (i, 0)),
        compiler_params=pltpu.CompilerParams(
            dimension_semantics=("parallel",),
            vmem_limit_bytes=32 * 1024 * 1024,
        ),
        cost_estimate=pl.CostEstimate(
            flops=flops, transcendentals=0, bytes_accessed=bytes_accessed),
    )(x_bf, w1, wh, bh, w6, b6)

    if B_pad != B:
        out = out[:B]   # padded rows carry bias-propagated junk; slice them away
    return out


def init_params(key, x_dim, u_dim):
    """Deterministic init matching the PyTorch module's shapes.

    Weights: kaiming_uniform_ (a=0) -> U(-sqrt(6/fan_in), +sqrt(6/fan_in)).
    Biases : PyTorch Linear default -> U(-1/sqrt(fan_in), +1/sqrt(fan_in)).
    """
    h = x_dim * 4
    dims = [(x_dim, h), (h, h), (h, h), (h, h), (h, h), (h, u_dim)]
    params = {}
    for i, (fan_in, fan_out) in enumerate(dims, start=1):
        key, kw, kb = jax.random.split(key, 3)
        w_bound = (6.0 / fan_in) ** 0.5
        b_bound = 1.0 / (fan_in ** 0.5)
        params[f"w{i}"] = jax.random.uniform(
            kw, (fan_out, fan_in), jnp.float32, -w_bound, w_bound)
        params[f"b{i}"] = jax.random.uniform(
            kb, (fan_out,), jnp.float32, -b_bound, b_bound)
    return params


def unet_ref_f32(x, params):
    """Pure-JAX f32 reference mirroring the PyTorch forward."""
    h = _leaky_relu(x @ params["w1"].T + params["b1"])
    h = _relu(h @ params["w2"].T + params["b2"])
    h = _relu(h @ params["w3"].T + params["b3"])
    h = _leaky_relu(h @ params["w4"].T + params["b4"])
    h = _leaky_relu(h @ params["w5"].T + params["b5"])
    return h @ params["w6"].T + params["b6"]


def unet_ref_bf16(x, params):
    """Reference matching the kernel's precision policy (bf16 MXU, f32 accum)."""
    def dot(a, w):
        return jnp.dot(a.astype(jnp.bfloat16), w.T.astype(jnp.bfloat16),
                       preferred_element_type=jnp.float32)
    h = _leaky_relu(dot(x, params["w1"]) + params["b1"])
    h = _relu(dot(h, params["w2"]) + params["b2"])
    h = _relu(dot(h, params["w3"]) + params["b3"])
    h = _leaky_relu(dot(h, params["w4"]) + params["b4"])
    h = _leaky_relu(dot(h, params["w5"]) + params["b5"])
    return dot(h, params["w6"]) + params["b6"]


if __name__ == "__main__":
    x_dim, u_dim, batch = 32, 8, 16   # hidden = x_dim * 4 = 128

    key = jax.random.PRNGKey(0)
    key, kx = jax.random.split(key)
    x = jax.random.normal(kx, (batch, x_dim), jnp.float32)
    params = init_params(key, x_dim, u_dim)

    prepped = prepare_params(params)          # one-time weight prep
    u_out = unet_forward(x, prepped)
    jax.block_until_ready(u_out)

    assert u_out.shape == (batch, u_dim)
    # Tight check against a precision-matched (bf16 MXU / f32 accum) reference.
    ref_bf16 = unet_ref_bf16(x, params)
    assert jnp.allclose(u_out, ref_bf16, atol=2e-3, rtol=2e-3), "mismatch vs bf16 reference"
    # Loose sanity check against the true f32 PyTorch-equivalent forward.
    ref_f32 = unet_ref_f32(x, params)
    assert jnp.allclose(u_out, ref_f32, atol=1e-1, rtol=1e-1), "mismatch vs f32 reference"

    print("KERNEL_OK")
</pallas_src>

<mosaic_0001>
module attributes {stable_mosaic.version = 11 : i64} {
  func.func @unet_kernel(%arg0: i32, %arg1: memref<16x32xbf16, #tpu.memory_space<vmem>>, %arg2: memref<32x128xbf16, #tpu.memory_space<vmem>>, %arg3: memref<4x128x128xbf16, #tpu.memory_space<vmem>>, %arg4: memref<5x128xf32, #tpu.memory_space<vmem>>, %arg5: memref<128x8xbf16, #tpu.memory_space<vmem>>, %arg6: memref<1x8xf32, #tpu.memory_space<vmem>>, %arg7: memref<16x8xf32, #tpu.memory_space<vmem>>) attributes {dimension_semantics = [#tpu.dimension_semantics<parallel>], iteration_bounds = array<i64: 1>, scalar_prefetch = 0 : i64, scratch_operands = 0 : i64, tpu.core_type = #tpu.core_type<tc>, window_params = [{transform_indices = @transform_0, window_bounds = array<i64: 16, 32>}, {pipeline_mode = #tpu.pipeline_mode<synchronous>, transform_indices = @transform_1, window_bounds = array<i64: 32, 128>}, {pipeline_mode = #tpu.pipeline_mode<synchronous>, transform_indices = @transform_2, window_bounds = array<i64: 4, 128, 128>}, {pipeline_mode = #tpu.pipeline_mode<synchronous>, transform_indices = @transform_3, window_bounds = array<i64: 5, 128>}, {pipeline_mode = #tpu.pipeline_mode<synchronous>, transform_indices = @transform_4, window_bounds = array<i64: 128, 8>}, {pipeline_mode = #tpu.pipeline_mode<synchronous>, transform_indices = @transform_5, window_bounds = array<i64: 1, 8>}, {transform_indices = @transform_6, window_bounds = array<i64: 16, 8>}]} {
    %c0 = arith.constant 0 : index
    %c0_0 = arith.constant 0 : index
    %0 = vector.load %arg1[%c0, %c0_0] : memref<16x32xbf16, #tpu.memory_space<vmem>>, vector<16x32xbf16>
    %c0_1 = arith.constant 0 : index
    %c0_2 = arith.constant 0 : index
    %1 = vector.load %arg2[%c0_1, %c0_2] : memref<32x128xbf16, #tpu.memory_space<vmem>>, vector<32x128xbf16>
    %cst = arith.constant dense<0.000000e+00> : vector<16x128xf32>
    %2 = tpu.matmul %0, %1, %cst {dimension_numbers = #tpu.dot_dimension_numbers<[1], [0], [0], [1], [0, 0, 1, 1], [], []>} : vector<16x32xbf16>, vector<32x128xbf16>, vector<16x128xf32> -> vector<16x128xf32>
    %c0_3 = arith.constant 0 : index
    %c0_4 = arith.constant 0 : index
    %3 = vector.load %arg4[%c0_3, %c0_4] : memref<5x128xf32, #tpu.memory_space<vmem>>, vector<1x128xf32>
    %4 = vector.broadcast %3 : vector<1x128xf32> to vector<16x128xf32>
    %5 = arith.addf %2, %4 : vector<16x128xf32>
    %cst_5 = arith.constant 0.000000e+00 : f32
    %6 = vector.broadcast %cst_5 : f32 to vector<16x128xf32>
    %7 = arith.cmpf oge, %5, %6 : vector<16x128xf32>
    %cst_6 = arith.constant 0.00999999977 : f32
    %8 = vector.broadcast %cst_6 : f32 to vector<16x128xf32>
    %9 = arith.mulf %8, %5 : vector<16x128xf32>
    %10 = arith.select %7, %5, %9 : vector<16x128xi1>, vector<16x128xf32>
    %11 = arith.truncf %10 : vector<16x128xf32> to vector<16x128xbf16>
    %c0_7 = arith.constant 0 : index
    %c0_8 = arith.constant 0 : index
    %c0_9 = arith.constant 0 : index
    %12 = vector.load %arg3[%c0_7, %c0_8, %c0_9] : memref<4x128x128xbf16, #tpu.memory_space<vmem>>, vector<1x128x128xbf16>
    %13 = vector.shape_cast %12 : vector<1x128x128xbf16> to vector<128x128xbf16>
    %cst_10 = arith.constant dense<0.000000e+00> : vector<16x128xf32>
    %14 = tpu.matmul %11, %13, %cst_10 {dimension_numbers = #tpu.dot_dimension_numbers<[1], [0], [0], [1], [0, 0, 1, 1], [], []>} : vector<16x128xbf16>, vector<128x128xbf16>, vector<16x128xf32> -> vector<16x128xf32>
    %c1 = arith.constant 1 : index
    %c0_11 = arith.constant 0 : index
    %15 = vector.load %arg4[%c1, %c0_11] : memref<5x128xf32, #tpu.memory_space<vmem>>, vector<1x128xf32>
    %16 = vector.broadcast %15 : vector<1x128xf32> to vector<16x128xf32>
    %17 = arith.addf %14, %16 : vector<16x128xf32>
    %cst_12 = arith.constant 0.000000e+00 : f32
    %18 = vector.broadcast %cst_12 : f32 to vector<16x128xf32>
    %19 = arith.maximumf %17, %18 : vector<16x128xf32>
    %20 = arith.truncf %19 : vector<16x128xf32> to vector<16x128xbf16>
    %c1_13 = arith.constant 1 : index
    %c0_14 = arith.constant 0 : index
    %c0_15 = arith.constant 0 : index
    %21 = vector.load %arg3[%c1_13, %c0_14, %c0_15] : memref<4x128x128xbf16, #tpu.memory_space<vmem>>, vector<1x128x128xbf16>
    %22 = vector.shape_cast %21 : vector<1x128x128xbf16> to vector<128x128xbf16>
    %cst_16 = arith.constant dense<0.000000e+00> : vector<16x128xf32>
    %23 = tpu.matmul %20, %22, %cst_16 {dimension_numbers = #tpu.dot_dimension_numbers<[1], [0], [0], [1], [0, 0, 1, 1], [], []>} : vector<16x128xbf16>, vector<128x128xbf16>, vector<16x128xf32> -> vector<16x128xf32>
    %c2 = arith.constant 2 : index
    %c0_17 = arith.constant 0 : index
    %24 = vector.load %arg4[%c2, %c0_17] : memref<5x128xf32, #tpu.memory_space<vmem>>, vector<1x128xf32>
    %25 = vector.broadcast %24 : vector<1x128xf32> to vector<16x128xf32>
    %26 = arith.addf %23, %25 : vector<16x128xf32>
    %cst_18 = arith.constant 0.000000e+00 : f32
    %27 = vector.broadcast %cst_18 : f32 to vector<16x128xf32>
    %28 = arith.maximumf %26, %27 : vector<16x128xf32>
    %29 = arith.truncf %28 : vector<16x128xf32> to vector<16x128xbf16>
    %c2_19 = arith.constant 2 : index
    %c0_20 = arith.constant 0 : index
    %c0_21 = arith.constant 0 : index
    %30 = vector.load %arg3[%c2_19, %c0_20, %c0_21] : memref<4x128x128xbf16, #tpu.memory_space<vmem>>, vector<1x128x128xbf16>
    %31 = vector.shape_cast %30 : vector<1x128x128xbf16> to vector<128x128xbf16>
    %cst_22 = arith.constant dense<0.000000e+00> : vector<16x128xf32>
    %32 = tpu.matmul %29, %31, %cst_22 {dimension_numbers = #tpu.dot_dimension_numbers<[1], [0], [0], [1], [0, 0, 1, 1], [], []>} : vector<16x128xbf16>, vector<128x128xbf16>, vector<16x128xf32> -> vector<16x128xf32>
    %c3 = arith.constant 3 : index
    %c0_23 = arith.constant 0 : index
    %33 = vector.load %arg4[%c3, %c0_23] : memref<5x128xf32, #tpu.memory_space<vmem>>, vector<1x128xf32>
    %34 = vector.broadcast %33 : vector<1x128xf32> to vector<16x128xf32>
    %35 = arith.addf %32, %34 : vector<16x128xf32>
    %cst_24 = arith.constant 0.000000e+00 : f32
    %36 = vector.broadcast %cst_24 : f32 to vector<16x128xf32>
    %37 = arith.cmpf oge, %35, %36 : vector<16x128xf32>
    %cst_25 = arith.constant 0.00999999977 : f32
    %38 = vector.broadcast %cst_25 : f32 to vector<16x128xf32>
    %39 = arith.mulf %38, %35 : vector<16x128xf32>
    %40 = arith.select %37, %35, %39 : vector<16x128xi1>, vector<16x128xf32>
    %41 = arith.truncf %40 : vector<16x128xf32> to vector<16x128xbf16>
    %c3_26 = arith.constant 3 : index
    %c0_27 = arith.constant 0 : index
    %c0_28 = arith.constant 0 : index
    %42 = vector.load %arg3[%c3_26, %c0_27, %c0_28] : memref<4x128x128xbf16, #tpu.memory_space<vmem>>, vector<1x128x128xbf16>
    %43 = vector.shape_cast %42 : vector<1x128x128xbf16> to vector<128x128xbf16>
    %cst_29 = arith.constant dense<0.000000e+00> : vector<16x128xf32>
    %44 = tpu.matmul %41, %43, %cst_29 {dimension_numbers = #tpu.dot_dimension_numbers<[1], [0], [0], [1], [0, 0, 1, 1], [], []>} : vector<16x128xbf16>, vector<128x128xbf16>, vector<16x128xf32> -> vector<16x128xf32>
    %c4 = arith.constant 4 : index
    %c0_30 = arith.constant 0 : index
    %45 = vector.load %arg4[%c4, %c0_30] : memref<5x128xf32, #tpu.memory_space<vmem>>, vector<1x128xf32>
    %46 = vector.broadcast %45 : vector<1x128xf32> to vector<16x128xf32>
    %47 = arith.addf %44, %46 : vector<16x128xf32>
    %cst_31 = arith.constant 0.000000e+00 : f32
    %48 = vector.broadcast %cst_31 : f32 to vector<16x128xf32>
    %49 = arith.cmpf oge, %47, %48 : vector<16x128xf32>
    %cst_32 = arith.constant 0.00999999977 : f32
    %50 = vector.broadcast %cst_32 : f32 to vector<16x128xf32>
    %51 = arith.mulf %50, %47 : vector<16x128xf32>
    %52 = arith.select %49, %47, %51 : vector<16x128xi1>, vector<16x128xf32>
    %53 = arith.truncf %52 : vector<16x128xf32> to vector<16x128xbf16>
    %c0_33 = arith.constant 0 : index
    %c0_34 = arith.constant 0 : index
    %54 = vector.load %arg5[%c0_33, %c0_34] : memref<128x8xbf16, #tpu.memory_space<vmem>>, vector<128x8xbf16>
    %cst_35 = arith.constant dense<0.000000e+00> : vector<16x8xf32>
    %55 = tpu.matmul %53, %54, %cst_35 {dimension_numbers = #tpu.dot_dimension_numbers<[1], [0], [0], [1], [0, 0, 1, 1], [], []>} : vector<16x128xbf16>, vector<128x8xbf16>, vector<16x8xf32> -> vector<16x8xf32>
    %c0_36 = arith.constant 0 : index
    %c0_37 = arith.constant 0 : index
    %56 = vector.load %arg6[%c0_36, %c0_37] : memref<1x8xf32, #tpu.memory_space<vmem>>, vector<1x8xf32>
    %57 = vector.broadcast %56 : vector<1x8xf32> to vector<16x8xf32>
    %58 = arith.addf %55, %57 : vector<16x8xf32>
    %c0_38 = arith.constant 0 : index
    %c0_39 = arith.constant 0 : index
    %59 = vector.load %arg7[%c0_38, %c0_39] : memref<16x8xf32, #tpu.memory_space<vmem>>, vector<16x8xf32>
    tpu.vector_store %arg7[%c0_38, %c0_39], %58 {strides = array<i32>} : memref<16x8xf32, #tpu.memory_space<vmem>>, vector<16x8xf32>,
    return
  }
  func.func @transform_0(%arg0: i32) -> (i32, i32) {
    %c0_i32 = arith.constant 0 : i32
    %c0_i32_0 = arith.constant 0 : i32
    return %arg0, %c0_i32 : i32, i32
  }
  func.func @transform_1(%arg0: i32) -> (i32, i32) {
    %c0_i32 = arith.constant 0 : i32
    %c0_i32_0 = arith.constant 0 : i32
    %c0_i32_1 = arith.constant 0 : i32
    return %c0_i32, %c0_i32_0 : i32, i32
  }
  func.func @transform_2(%arg0: i32) -> (i32, i32, i32) {
    %c0_i32 = arith.constant 0 : i32
    %c0_i32_0 = arith.constant 0 : i32
    %c0_i32_1 = arith.constant 0 : i32
    %c0_i32_2 = arith.constant 0 : i32
    return %c0_i32, %c0_i32_0, %c0_i32_1 : i32, i32, i32
  }
  func.func @transform_3(%arg0: i32) -> (i32, i32) {
    %c0_i32 = arith.constant 0 : i32
    %c0_i32_0 = arith.constant 0 : i32
    %c0_i32_1 = arith.constant 0 : i32
    return %c0_i32, %c0_i32_0 : i32, i32
  }
  func.func @transform_4(%arg0: i32) -> (i32, i32) {
    %c0_i32 = arith.constant 0 : i32
    %c0_i32_0 = arith.constant 0 : i32
    %c0_i32_1 = arith.constant 0 : i32
    return %c0_i32, %c0_i32_0 : i32, i32
  }
  func.func @transform_5(%arg0: i32) -> (i32, i32) {
    %c0_i32 = arith.constant 0 : i32
    %c0_i32_0 = arith.constant 0 : i32
    %c0_i32_1 = arith.constant 0 : i32
    return %c0_i32, %c0_i32_0 : i32, i32
  }
  func.func @transform_6(%arg0: i32) -> (i32, i32) {
    %c0_i32 = arith.constant 0 : i32
    %c0_i32_0 = arith.constant 0 : i32
    return %arg0, %c0_i32 : i32, i32
  }
}

</mosaic_0001>

<bundles_post_ra>
// kernel: unet_forward.1
= control target key start
LH: loop header
LB: loop body
LE: loop exit
PB: predicated region body
PF: predicated region fallthrough
CT: control target
= control target key end

     0   :  { %11 = vsyncpa [#allocation3], 0  ;;  %s979_s21 = smov [#allocation2]   ;;  %s1142_s0 = inlined_call_operand.vmem [shape: bf16[16,32], index: 0, kind: input, shape index: {}]   ;;  %s1143_s1 = inlined_call_operand.vmem [shape: bf16[32,128], index: 1, kind: input, shape index: {}]   ;;  %s1144_s2 = inlined_call_operand.hbm [shape: bf16[4,128,128], index: 2, kind: input, shape index: {}]   ;;  %s1145_s3 = inlined_call_operand.vmem [shape: f32[5,128], index: 3, kind: input, shape index: {}]   ;;  %s1146_s4 = inlined_call_operand.vmem [shape: bf16[128,8], index: 4, kind: input, shape index: {}]   ;;  %s1147_s5 = inlined_call_operand.vmem [shape: f32[1,8], index: 5, kind: input, shape index: {}]   ;;  %s1148_s6 = inlined_call_operand.vmem [shape: f32[16,8], index: 6, kind: output, shape index: {}]  }
   0x1   :  { %s21_s22 = sshll.u32 %s979_s21, 4  ;;  %s955_s25 = scalar_lea.hbm %s1144_s2, 4096  ;;  %s22_s22 = int_to_ptr.vmem [resolvable:$true] %s21_s22 }
   0x2   :  { %p956_p0 = scmp.ne.s32.totalorder %s1144_s2, %s955_s25  ;;  %p959_p1 = scmp.lt.u32.totalorder %s955_s25, %s1144_s2 }
   0x4   :  { %p961_p2 = pnand %p959_p1, %p956_p0 }
   0x6   :  { %964 = shalt.err (!%p961_p2)
}
   0x7   :  { %s965_s30 = scalar_lea.vmem %s22_s22, 4096  ;;  %p970_p4 = scmp.lt.s32.totalorder %s22_s22, %s22_s22 }
   0x8   :  { %p966_p3 = scmp.ne.s32.totalorder %s22_s22, %s965_s30  ;;  %p971_p5 = scmp.lt.s32.totalorder %s965_s30, %s965_s30 }
   0xa   :  { %p972_p6 = por %p971_p5, %p970_p4 }
   0xc   :  { %p973_p7 = pnand %p972_p6, %p966_p3 }
   0xe   :  { %976 = shalt.err (!%p973_p7)
}
   0xf   :  { %s980_s7 = smov 64   ;;  %s981_s8 = smov 4  }
  0x10   :  { %27 = dma.hbm_to_vmem [thread:$0]  %s1144_s2, 4096, %s22_s22, [#allocation3], %s980_s7, %s980_s7, %s981_s8  }
  0x11   :  { %977 = dma.done.wait [#allocation3], 4096  }
  0x12   :  { %978 = vsyncadd [#allocation3], 4294963200  ;;  %v982_v0 = vmov 0.0   ;;  %vm983_vm0 = vmmov 0   ;;  %v912_v1 = vld [vmem:[%s1143_s1] sm:$0xff]   ;;  %v913_v2 = vld [vmem:[%s1143_s1 + $0x8] sm:$0xff]  }
  0x13   :  { %799 = vmatprep.subr.bf16.mxu0 %v982_v0  ;;  %803 = vmatprep.mubr.msk.bf16.mxu0 %vm983_vm0, %v982_v0  ;;  %v915_v3 = vld [vmem:[#allocation2] sm:$0xff]   ;;  %v914_v4 = vld [vmem:[%s1142_s0] sm:$0xff]   ;;  %v916_v5 = vld [vmem:[#allocation2 + $0x8] sm:$0xff]   ;;  %vm66_vm1 = vcmask 261120   ;;  %vm693_vm8 = vcmask 64512  }
  0x14   :  { %807 = vmatprep.subr.bf16.mxu1 %v982_v0  ;;  %823 = vmatprep.mubr.msk.bf16.mxu1 %vm983_vm0, %v982_v0  ;;  %v917_v6 = vld [vmem:[#allocation2 + $0x10] sm:$0xff]   ;;  %v918_v7 = vld [vmem:[#allocation2 + $0x18] sm:$0xff]   ;;  %v919_v8 = vld [vmem:[#allocation2 + $0x20] sm:$0xff]  }
  0x15   :  { %800 = vmatpush3.bf16.msra.mxu0 %v912_v1  ;;  %808 = vmatpush3.bf16.msra.mxu1 %v915_v3  ;;  %v920_v9 = vld [vmem:[#allocation2 + $0x28] sm:$0xff]   ;;  %v921_v10 = vld [vmem:[#allocation2 + $0x30] sm:$0xff]   ;;  %v922_v11 = vld [vmem:[#allocation2 + $0x38] sm:$0xff]  }
  0x16   :  { %801 = vmatprep.subr.bf16.mxu0 %v982_v0  ;;  %809 = vmatprep.subr.bf16.mxu1 %v982_v0  ;;  %v923_v12 = vld [vmem:[#allocation2 + $0x40] sm:$0xff]   ;;  %v924_v13 = vld [vmem:[#allocation2 + $0x48] sm:$0xff]   ;;  %v925_v14 = vld [vmem:[#allocation2 + $0x50] sm:$0xff]  }
  0x17   :  { %v926_v15 = vld [vmem:[#allocation2 + $0x58] sm:$0xff]   ;;  %v927_v16 = vld [vmem:[#allocation2 + $0x60] sm:$0xff]   ;;  %v928_v17 = vld [vmem:[#allocation2 + $0x68] sm:$0xff]  }
  0x18   :  { %v701_v18 = vld [vmem:[%s1145_s3] ss:$0 sm:$0xff]  ;;  %v929_v30 = vld [vmem:[#allocation2 + $0x70] sm:$0xff]   ;;  %v931_v32 = vld [vmem:[#allocation2 + $0x80] sm:$0xff]  }
  0x19   :  { %802 = vmatpush3.bf16.msra.mxu0 %v913_v2  ;;  %810 = vmatpush3.bf16.msra.mxu1 %v916_v5  ;;  %v930_v31 = vld [vmem:[#allocation2 + $0x78] sm:$0xff]   ;;  %v932_v33 = vld [vmem:[#allocation2 + $0x88] sm:$0xff]   ;;  %v933_v34 = vld [vmem:[#allocation2 + $0x90] sm:$0xff]  }
  0x1a   :  { %827 = vmatprep.subr.bf16.mxu0 %v982_v0  ;;  %811 = vmatprep.subr.bf16.mxu1 %v982_v0  ;;  %v934_v35 = vld [vmem:[#allocation2 + $0x98] sm:$0xff]   ;;  %v935_v36 = vld [vmem:[#allocation2 + $0xa0] sm:$0xff]   ;;  %v936_v37 = vld [vmem:[#allocation2 + $0xa8] sm:$0xff]  }
  0x1b   :  { %v706_v38 = vld [vmem:[%s1145_s3 + $0x1] ss:$0 sm:$0xff]  ;;  %v937_v48 = vld [vmem:[#allocation2 + $0xb0] sm:$0xff]   ;;  %v939_v50 = vld [vmem:[#allocation2 + $0xc0] sm:$0xff]  }
  0x1c   :  { %804 = vmatmul.mubr.msk.bf16.vlgmr.msra.gmra.mrb[0].mxu0 %vm66_vm1, %v914_v4  ;;  %v938_v49 = vld [vmem:[#allocation2 + $0xb8] sm:$0xff]   ;;  %v940_v51 = vld [vmem:[#allocation2 + $0xc8] sm:$0xff]   ;;  %v941_v52 = vld [vmem:[#allocation2 + $0xd0] sm:$0xff]  }
  0x1d   :  { %843 = vmatprep.mubr.msk.bf16.mxu0 %vm983_vm0, %v982_v0  ;;  %812 = vmatpush3.bf16.msra.mxu1 %v917_v6  ;;  %v942_v53 = vld [vmem:[#allocation2 + $0xd8] sm:$0xff]   ;;  %v943_v54 = vld [vmem:[#allocation2 + $0xe0] sm:$0xff]   ;;  %v944_v55 = vld [vmem:[#allocation2 + $0xe8] sm:$0xff]  }
  0x1e   :  { %813 = vmatprep.subr.bf16.mxu1 %v982_v0  ;;  %828 = vmatpush3.bf16.msra.mxu0 %v923_v12  ;;  %v715_v56 = vld [vmem:[%s1145_s3 + $0x2] ss:$0 sm:$0xff]  ;;  %v945_v3 = vld [vmem:[#allocation2 + $0xf0] sm:$0xff]   ;;  %v948_v6 = vld [vmem:[%s1146_s4 + $0x8] sm:$0xff]  }
  0x1f   :  { %829 = vmatprep.subr.bf16.mxu0 %v982_v0  ;;  %v946_v4 = vld [vmem:[#allocation2 + $0xf8] sm:$0xff]  }
  0x20   :  { %v947_v5 = vld [vmem:[%s1146_s4] sm:$0xff]  }
  0x21   :  { %814 = vmatpush3.bf16.msra.mxu1 %v918_v7  ;;  %v949_v7 = vld [vmem:[%s1146_s4 + $0x10] sm:$0xff]  }
  0x22   :  { %815 = vmatprep.subr.bf16.mxu1 %v982_v0  ;;  %830 = vmatpush3.bf16.msra.mxu0 %v924_v13 }
  0x23   :  { %831 = vmatprep.subr.bf16.mxu0 %v982_v0 }
  0x25   :  { %816 = vmatpush3.bf16.msra.mxu1 %v919_v8  ;;  %v950_v8 = vld [vmem:[%s1146_s4 + $0x18] sm:$0xff]  }
  0x26   :  { %817 = vmatprep.subr.bf16.mxu1 %v982_v0  ;;  %832 = vmatpush3.bf16.msra.mxu0 %v925_v14 }
  0x27   :  { %833 = vmatprep.subr.bf16.mxu0 %v982_v0 }
  0x29   :  { %818 = vmatpush3.bf16.msra.mxu1 %v920_v9  ;;  %v951_v9 = vld [vmem:[%s1146_s4 + $0x20] sm:$0xff]  }
  0x2a   :  { %819 = vmatprep.subr.bf16.mxu1 %v982_v0  ;;  %834 = vmatpush3.bf16.msra.mxu0 %v926_v15 }
  0x2b   :  { %835 = vmatprep.subr.bf16.mxu0 %v982_v0 }
  0x2d   :  { %820 = vmatpush3.bf16.msra.mxu1 %v921_v10  ;;  %v952_v10 = vld [vmem:[%s1146_s4 + $0x28] sm:$0xff]  }
  0x2e   :  { %821 = vmatprep.subr.bf16.mxu1 %v982_v0  ;;  %836 = vmatpush3.bf16.msra.mxu0 %v927_v16 }
  0x2f   :  { %837 = vmatprep.subr.bf16.mxu0 %v982_v0 }
  0x31   :  { %822 = vmatpush3.bf16.msra.mxu1 %v922_v11  ;;  %v724_v11 = vld [vmem:[%s1145_s3 + $0x3] ss:$0 sm:$0xff] }
  0x32   :  { %847 = vmatprep.subr.bf16.mxu1 %v982_v0  ;;  %838 = vmatpush3.bf16.msra.mxu0 %v928_v17 }
  0x33   :  { %839 = vmatprep.subr.bf16.mxu0 %v982_v0 }
  0x36   :  { %840 = vmatpush3.bf16.msra.mxu0 %v929_v30 }
  0x37   :  { %841 = vmatprep.subr.bf16.mxu0 %v982_v0 }
  0x3a   :  { %842 = vmatpush3.bf16.msra.mxu0 %v930_v31 }
  0x3b   :  { %867 = vmatprep.subr.bf16.mxu0 %v982_v0 }
  0xef   :  { %v104_v19 = vpop.f32.mrb[0].mxu0 }
  0xf0   :  { %v105_v20 = vadd.f32 %v701_v18, %v104_v19  ;;  %v805_v21 = vpop.f32.mrb[1].mxu0 }
  0xf1   :  { %v107_v22 = vpop.f32.mrb[2].mxu0 }
  0xf2   :  { %v113_v23 = vmul.f32 0.01, %v105_v20  ;;  %v108_v24 = vadd.f32 %v701_v18, %v107_v22  ;;  %v806_v25 = vpop.f32.mrb[3].mxu0  ;;  %vm111_vm2 = vcmp.ge.f32.partialorder %v105_v20, 0.0 }
  0xf3   :  { %v733_v25 = vld [vmem:[%s1145_s3 + $0x4] ss:$0 sm:$0xff] }
  0xf4   :  { %vm112_vm3 = vcmp.ge.f32.partialorder %v108_v24, 0.0  ;;  %v114_v26 = vmul.f32 0.01, %v108_v24  ;;  %v115_v27 = vsel %vm111_vm2, %v105_v20, %v113_v23  ;;  %v953_v23 = vld [vmem:[%s1146_s4 + $0x30] sm:$0xff]  }
  0xf6   :  { %v116_v28 = vsel %vm112_vm3, %v108_v24, %v114_v26  ;;  %v954_v24 = vld [vmem:[%s1146_s4 + $0x38] sm:$0xff]  }
  0xf7   :  { %v117_v29 = vpack.c.bf16 %v116_v28, %v115_v27 }
  0xf9   :  { %824 = vmatmul.mubr.bf16.vlgmr.msra.gmra.mrb[0].mxu1 %v117_v29 }
  0xfa   :  { %863 = vmatprep.mubr.msk.bf16.mxu1 %vm983_vm0, %v982_v0  ;;  %848 = vmatpush3.bf16.msra.mxu1 %v931_v32 }
  0xfb   :  { %849 = vmatprep.subr.bf16.mxu1 %v982_v0 }
  0xfe   :  { %850 = vmatpush3.bf16.msra.mxu1 %v932_v33 }
  0xff   :  { %851 = vmatprep.subr.bf16.mxu1 %v982_v0 }
 0x102   :  { %852 = vmatpush3.bf16.msra.mxu1 %v933_v34 }
 0x103   :  { %853 = vmatprep.subr.bf16.mxu1 %v982_v0 }
 0x106   :  { %854 = vmatpush3.bf16.msra.mxu1 %v934_v35 }
 0x107   :  { %855 = vmatprep.subr.bf16.mxu1 %v982_v0 }
 0x10a   :  { %856 = vmatpush3.bf16.msra.mxu1 %v935_v36  ;;  %v742_v36 = vld [vmem:[%s1147_s5] ss:$0 sm:$0xff] }
 0x10b   :  { %857 = vmatprep.subr.bf16.mxu1 %v982_v0 }
 0x10e   :  { %858 = vmatpush3.bf16.msra.mxu1 %v936_v37 }
 0x10f   :  { %859 = vmatprep.subr.bf16.mxu1 %v982_v0 }
 0x112   :  { %860 = vmatpush3.bf16.msra.mxu1 %v937_v48 }
 0x113   :  { %861 = vmatprep.subr.bf16.mxu1 %v982_v0 }
 0x116   :  { %862 = vmatpush3.bf16.msra.mxu1 %v938_v49 }
 0x117   :  { %887 = vmatprep.subr.bf16.mxu1 %v982_v0 }
 0x1cc   :  { %v221_v39 = vpop.f32.mrb[0].mxu1 }
 0x1cd   :  { %v222_v40 = vadd.f32 %v706_v38, %v221_v39  ;;  %v825_v41 = vpop.f32.mrb[1].mxu1 }
 0x1ce   :  { %v224_v42 = vpop.f32.mrb[2].mxu1 }
 0x1cf   :  { %v225_v43 = vadd.f32 %v706_v38, %v224_v42  ;;  %v826_v44 = vpop.f32.mrb[3].mxu1  ;;  %v228_v45 = vmax.f32 %v222_v40, 0.0 }
 0x1d1   :  { %v229_v46 = vmax.f32 %v225_v43, 0.0 }
 0x1d3   :  { %v230_v47 = vpack.c.bf16 %v229_v46, %v228_v45 }
 0x1d5   :  { %844 = vmatmul.mubr.bf16.vlgmr.msra.gmra.mrb[4].mxu0 %v230_v47 }
 0x1d6   :  { %883 = vmatprep.mubr.msk.bf16.mxu0 %vm983_vm0, %v982_v0  ;;  %868 = vmatpush3.bf16.msra.mxu0 %v939_v50 }
 0x1d7   :  { %869 = vmatprep.subr.bf16.mxu0 %v982_v0 }
 0x1da   :  { %870 = vmatpush3.bf16.msra.mxu0 %v940_v51 }
 0x1db   :  { %871 = vmatprep.subr.bf16.mxu0 %v982_v0 }
 0x1de   :  { %872 = vmatpush3.bf16.msra.mxu0 %v941_v52 }
 0x1df   :  { %873 = vmatprep.subr.bf16.mxu0 %v982_v0 }
 0x1e2   :  { %874 = vmatpush3.bf16.msra.mxu0 %v942_v53 }
 0x1e3   :  { %875 = vmatprep.subr.bf16.mxu0 %v982_v0 }
 0x1e6   :  { %876 = vmatpush3.bf16.msra.mxu0 %v943_v54 }
 0x1e7   :  { %877 = vmatprep.subr.bf16.mxu0 %v982_v0 }
 0x1ea   :  { %878 = vmatpush3.bf16.msra.mxu0 %v944_v55 }
 0x1eb   :  { %879 = vmatprep.subr.bf16.mxu0 %v982_v0 }
 0x1ee   :  { %880 = vmatpush3.bf16.msra.mxu0 %v945_v3 }
 0x1ef   :  { %881 = vmatprep.subr.bf16.mxu0 %v982_v0 }
 0x1f2   :  { %882 = vmatpush3.bf16.msra.mxu0 %v946_v4 }
 0x2a8   :  { %v335_v57 = vpop.f32.mrb[4].mxu0 }
 0x2a9   :  { %v336_v58 = vadd.f32 %v715_v56, %v335_v57  ;;  %v845_v59 = vpop.f32.mrb[5].mxu0 }
 0x2aa   :  { %v338_v60 = vpop.f32.mrb[6].mxu0 }
 0x2ab   :  { %v339_v61 = vadd.f32 %v715_v56, %v338_v60  ;;  %v846_v62 = vpop.f32.mrb[7].mxu0  ;;  %v342_v63 = vmax.f32 %v336_v58, 0.0 }
 0x2ad   :  { %v343_v1 = vmax.f32 %v339_v61, 0.0 }
 0x2af   :  { %v344_v2 = vpack.c.bf16 %v343_v1, %v342_v63 }
 0x2b1   :  { %864 = vmatmul.mubr.bf16.vlgmr.msra.gmra.mrb[4].mxu1 %v344_v2 }
 0x2b2   :  { %903 = vmatprep.mubr.msk.bf16.mxu1 %vm983_vm0, %v982_v0  ;;  %888 = vmatpush3.bf16.msra.mxu1 %v947_v5 }
 0x2b3   :  { %889 = vmatprep.subr.bf16.mxu1 %v982_v0 }
 0x2b6   :  { %890 = vmatpush3.bf16.msra.mxu1 %v948_v6 }
 0x2b7   :  { %891 = vmatprep.subr.bf16.mxu1 %v982_v0 }
 0x2ba   :  { %892 = vmatpush3.bf16.msra.mxu1 %v949_v7 }
 0x2bb   :  { %893 = vmatprep.subr.bf16.mxu1 %v982_v0 }
 0x2be   :  { %894 = vmatpush3.bf16.msra.mxu1 %v950_v8 }
 0x2bf   :  { %895 = vmatprep.subr.bf16.mxu1 %v982_v0 }
 0x2c2   :  { %896 = vmatpush3.bf16.msra.mxu1 %v951_v9 }
 0x2c3   :  { %897 = vmatprep.subr.bf16.mxu1 %v982_v0 }
 0x2c6   :  { %898 = vmatpush3.bf16.msra.mxu1 %v952_v10 }
 0x2c7   :  { %899 = vmatprep.subr.bf16.mxu1 %v982_v0 }
 0x2ca   :  { %900 = vmatpush3.bf16.msra.mxu1 %v953_v23 }
 0x2cb   :  { %901 = vmatprep.subr.bf16.mxu1 %v982_v0 }
 0x2ce   :  { %902 = vmatpush3.bf16.msra.mxu1 %v954_v24 }
 0x384   :  { %v449_v12 = vpop.f32.mrb[4].mxu1 }
 0x385   :  { %v450_v13 = vadd.f32 %v724_v11, %v449_v12  ;;  %v865_v14 = vpop.f32.mrb[5].mxu1 }
 0x386   :  { %v452_v15 = vpop.f32.mrb[6].mxu1 }
 0x387   :  { %v458_v16 = vmul.f32 0.01, %v450_v13  ;;  %v453_v17 = vadd.f32 %v724_v11, %v452_v15  ;;  %v866_v18 = vpop.f32.mrb[7].mxu1  ;;  %vm456_vm4 = vcmp.ge.f32.partialorder %v450_v13, 0.0 }
 0x389   :  { %vm457_vm5 = vcmp.ge.f32.partialorder %v453_v17, 0.0  ;;  %v459_v19 = vmul.f32 0.01, %v453_v17  ;;  %v460_v20 = vsel %vm456_vm4, %v450_v13, %v458_v16 }
 0x38b   :  { %v461_v21 = vsel %vm457_vm5, %v453_v17, %v459_v19 }
 0x38c   :  { %v462_v22 = vpack.c.bf16 %v461_v21, %v460_v20 }
 0x38e   :  { %884 = vmatmul.mubr.bf16.vlgmr.msra.gmra.mrb[8].mxu0 %v462_v22 }
 0x461   :  { %v567_v26 = vpop.f32.mrb[8].mxu0 }
 0x462   :  { %v568_v27 = vadd.f32 %v733_v25, %v567_v26  ;;  %v885_v28 = vpop.f32.mrb[9].mxu0 }
 0x463   :  { %v570_v29 = vpop.f32.mrb[10].mxu0 }
 0x464   :  { %v576_v30 = vmul.f32 0.01, %v568_v27  ;;  %v571_v31 = vadd.f32 %v733_v25, %v570_v29  ;;  %v886_v32 = vpop.f32.mrb[11].mxu0  ;;  %vm574_vm6 = vcmp.ge.f32.partialorder %v568_v27, 0.0 }
 0x466   :  { %vm575_vm7 = vcmp.ge.f32.partialorder %v571_v31, 0.0  ;;  %v577_v33 = vmul.f32 0.01, %v571_v31  ;;  %v578_v0 = vsel %vm574_vm6, %v568_v27, %v576_v30 }
 0x468   :  { %v579_v34 = vsel %vm575_vm7, %v571_v31, %v577_v33 }
 0x469   :  { %v580_v35 = vpack.c.bf16 %v579_v34, %v578_v0 }
 0x46b   :  { %904 = vmatmul.mubr.bf16.vlgmr.msra.gmra.mrb[8].mxu1 %v580_v35 }
 0x53e   :  { %v686_v37 = vpop.f32.mrb[8].mxu1 }
 0x53f   :  { %v687_v38 = vadd.f32 %v742_v36, %v686_v37  ;;  %v905_v39 = vpop.f32.mrb[9].mxu1 }
 0x540   :  { %v689_v40 = vpop.f32.mrb[10].mxu1 }
 0x541   :  { %694 = vst.msk [vmem:[%s1148_s6] sm:$0xff] %vm693_vm8, %v687_v38  ;;  %v690_v41 = vadd.f32 %v742_v36, %v689_v40  ;;  %v906_v42 = vpop.f32.mrb[11].mxu1 }
 0x543   :  { %695 = vst.msk [vmem:[%s1148_s6 + $0x8] sm:$0xff] %vm693_vm8, %v690_v41 }
 0x544   :  { %700 = vsyncpa [#allocation3], 1 }

</bundles_post_ra>
